<compile_context>
chip_gen: v6e
topology: v6e:2x2x1
jax: 0.10.0
libtpu: 0.0.40
codegen_flags: <defaults>
</compile_context>

<pallas_src>
import math

import jax
import jax.numpy as jnp
from jax.experimental import pallas as pl
from jax.experimental.pallas import tpu as pltpu


# --------------------------------------------------------------------------- #
# Encoding table (matches the PyTorch module buffer)
# --------------------------------------------------------------------------- #
def build_encoding(sequence_length: int, d_model: int) -> jnp.ndarray:
    """Deterministic sin/cos positional-encoding table, shape (S, D), f32."""
    assert d_model % 2 == 0, "d_model must be even (matches the PyTorch module)"
    position = jnp.arange(sequence_length, dtype=jnp.float32)[:, None]      # (S, 1)
    div = jnp.exp(
        jnp.arange(0, d_model, 2, dtype=jnp.float32)
        * (-math.log(10000.0) / d_model)
    )                                                                        # (D/2,)
    enc = jnp.zeros((sequence_length, d_model), dtype=jnp.float32)
    enc = enc.at[:, 0::2].set(jnp.sin(position * div))
    enc = enc.at[:, 1::2].set(jnp.cos(position * div))
    return enc


def prepare_encoding(encoding: jnp.ndarray, seq_len: int, dtype) -> jnp.ndarray:
    """Slice + cast ONCE (hoisted out of the per-call hot path).  Returns (S, D)."""
    return encoding[:seq_len, :].astype(dtype)


# --------------------------------------------------------------------------- #
# Kernel (shared by the 2-D lane-dense path and the 3-D fallback path)
# --------------------------------------------------------------------------- #
def _pe_add_kernel(x_ref, pe_ref, o_ref):
    # pe_ref has a size-1 leading (batch) dim -> broadcast add, lane-dense store.
    o_ref[...] = (x_ref[...] + pe_ref[...]).astype(o_ref.dtype)


# --------------------------------------------------------------------------- #
# Tile selection
# --------------------------------------------------------------------------- #
def _divisors(m: int):
    ds = set()
    i = 1
    while i * i <= m:
        if m % i == 0:
            ds.add(i)
            ds.add(m // i)
        i += 1
    return sorted(ds)


def _sublane_multiple(dtype) -> int:
    # Rows per vreg along sublanes: 8 for 32-bit, 16 for bf16, 32 for int8/fp8.
    return max(8, 32 // jnp.dtype(dtype).itemsize)


def _default_tile_budget() -> int:
    """Generation-aware per-tile byte budget.  x-tile + out-tile, each double
    buffered (~4x tile) plus the small resident PE tile must stay well under
    the 32 MiB scoped limit requested below (and v7x's 64 MiB physical VMEM)."""
    try:
        vmem = int(pltpu.get_tpu_info().vmem_capacity_bytes)
    except Exception:
        vmem = 64 << 20                       # conservative (v7x-sized) fallback
    return max(1 << 20, min(6 << 20, vmem // 16))   # v5e/v6e: 6 MiB, v7x: 4 MiB


def _choose_tiles_2d(B, N, itemsize, sub, budget):
    """Tiles for the flattened (B, N) view; requires N % 128 == 0.
    tc: multiple-of-128 divisor of N (no padded edge column tiles).
    rb: full batch or a dtype-aware sublane multiple, grown toward the budget."""
    cands = sorted(128 * d for d in _divisors(N // 128))
    fitting = [c for c in cands if sub * c * itemsize <= budget]
    tc = fitting[-1] if fitting else cands[0]

    rows_fit = max(1, budget // (tc * itemsize))
    rb = B if B <= rows_fit else max(sub, (rows_fit // sub) * sub)
    if rb >= B:
        rb = B                                          # full extent is always legal

    # v7x megacore: avoid a degenerate single-step grid when there is real work.
    if pl.cdiv(B, rb) * (N // tc) == 1 and B * N * itemsize >= (2 << 20):
        smaller = [c for c in cands if c < tc]
        if smaller:
            tc = smaller[-1]
        elif B >= 2 * sub:
            rb = max(sub, ((-(-B // 2)) // sub) * sub)
    return rb, tc


def _choose_tiles_3d(B, S, D, itemsize, budget):
    """Tiles for the 3-D (B, S, D) view (used when S*D % 128 != 0): full-D last
    block dim keeps the block legal; (rb, ts) are budget-bounded so long rows
    cannot blow past the scoped VMEM limit (the v7x hazard)."""
    row_bytes = D * itemsize
    if B * S * row_bytes <= budget:
        return B, S
    if S <= 8 or S * row_bytes <= budget:
        ts = S
    else:
        cap = max(8, min((budget // row_bytes) // 8 * 8, (S // 8) * 8))
        ts = next((t for t in range(cap, 7, -8) if S % t == 0), cap)  # prefer divisor
    rb = max(1, min(B, budget // (ts * row_bytes)))
    return rb, ts


# --------------------------------------------------------------------------- #
# Forward
# --------------------------------------------------------------------------- #
def positional_encoding_forward(x: jnp.ndarray,
                                encoding: jnp.ndarray,
                                *,
                                tile_budget_bytes: int | None = None,
                                donate_x: bool = False) -> jnp.ndarray:
    """x: (B, S, D); encoding: (>=S, D) table (pass a prepare_encoding() result
    to keep the slice/cast out of the hot path).  Eval-mode dropout == identity."""
    B, S, D = x.shape
    assert encoding.ndim == 2 and encoding.shape[1] == D and encoding.shape[0] >= S
    if encoding.shape[0] != S or encoding.dtype != x.dtype:
        encoding = prepare_encoding(encoding, S, x.dtype)   # fallback; prefer hoisting

    itemsize = jnp.dtype(x.dtype).itemsize
    budget = tile_budget_bytes if tile_budget_bytes is not None else _default_tile_budget()
    sub = _sublane_multiple(x.dtype)
    N = S * D

    cost = pl.CostEstimate(flops=B * N, transcendentals=0,
                           bytes_accessed=(2 * B * N + N) * itemsize)
    cparams = pltpu.CompilerParams(
        dimension_semantics=("parallel", "parallel"),
        vmem_limit_bytes=32 * 1024 * 1024,
    )
    io_alias = {0: 0} if donate_x else {}

    if N % 128 == 0:
        # Lane-dense flattened path: last dim is a big multiple of 128 even for
        # small d_model -> full, unmasked vst.  Batch is the inner grid axis and
        # the PE block index is constant along it, so the PE tile stays resident.
        rb, tc = _choose_tiles_2d(B, N, itemsize, sub, budget)
        grid = (N // tc, pl.cdiv(B, rb))
        out2 = pl.pallas_call(
            _pe_add_kernel,
            out_shape=jax.ShapeDtypeStruct((B, N), x.dtype),
            grid_spec=pltpu.PrefetchScalarGridSpec(
                num_scalar_prefetch=0,
                grid=grid,
                in_specs=[
                    pl.BlockSpec((rb, tc), lambda c, b: (b, c)),   # x tile
                    pl.BlockSpec((1, tc), lambda c, b: (0, c)),    # PE (batch-invariant)
                ],
                out_specs=pl.BlockSpec((rb, tc), lambda c, b: (b, c)),
            ),
            compiler_params=cparams,
            cost_estimate=cost,
            input_output_aliases=io_alias,
        )(x.reshape(B, N), encoding.reshape(1, N))
        return out2.reshape(B, S, D)

    # Fallback: S*D not a multiple of 128 -> tile the original 3-D view.
    rb, ts = _choose_tiles_3d(B, S, D, itemsize, budget)
    grid = (pl.cdiv(S, ts), pl.cdiv(B, rb))
    return pl.pallas_call(
        _pe_add_kernel,
        out_shape=jax.ShapeDtypeStruct((B, S, D), x.dtype),
        grid_spec=pltpu.PrefetchScalarGridSpec(
            num_scalar_prefetch=0,
            grid=grid,
            in_specs=[
                pl.BlockSpec((rb, ts, D), lambda s, b: (b, s, 0)),   # x tile
                pl.BlockSpec((1, ts, D), lambda s, b: (0, s, 0)),    # PE (batch-invariant)
            ],
            out_specs=pl.BlockSpec((rb, ts, D), lambda s, b: (b, s, 0)),
        ),
        compiler_params=cparams,
        cost_estimate=cost,
        input_output_aliases=io_alias,
    )(x, encoding.reshape(1, S, D))


if __name__ == "__main__":
    # Module config (deterministic, synthetic)
    d_model = 32
    sequence_length = 16
    dropout_p = 0.1  # eval mode -> identity

    # Input: batch=2, seq=8 (<= sequence_length), hidden=d_model
    B, S, D = 2, 8, d_model
    key = jax.random.PRNGKey(0)
    x = jax.random.normal(key, (B, S, D), dtype=jnp.float32)

    encoding = build_encoding(sequence_length, d_model)

    # Hoisted PE preparation (slice + cast once, reused across calls).
    pe_f32 = prepare_encoding(encoding, S, jnp.float32)

    # f32 path (lane-dense flattened kernel)
    out = jax.block_until_ready(positional_encoding_forward(x, pe_f32))
    ref = x + encoding[None, :S, :]
    assert out.shape == (B, S, D) and out.dtype == x.dtype
    assert jnp.allclose(out, ref, atol=1e-6), "f32 mismatch vs reference"

    # bf16 path (dtype-aware sublane multiple = 16; memory-bound kernel)
    x_bf16 = x.astype(jnp.bfloat16)
    pe_bf16 = prepare_encoding(encoding, S, jnp.bfloat16)
    out_bf16 = jax.block_until_ready(positional_encoding_forward(x_bf16, pe_bf16))
    ref_bf16 = x_bf16 + pe_bf16[None]
    assert out_bf16.dtype == jnp.bfloat16
    assert jnp.allclose(out_bf16.astype(jnp.float32),
                        ref_bf16.astype(jnp.float32), atol=1e-2), "bf16 mismatch"

    # Larger batch (exercises the joint rb/tc chooser; still small)
    x_big = jax.random.normal(jax.random.PRNGKey(1), (16, S, D), dtype=jnp.float32)
    out_big = jax.block_until_ready(positional_encoding_forward(x_big, pe_f32))
    assert jnp.allclose(out_big, x_big + encoding[None, :S, :], atol=1e-6), "large-B mismatch"

    # Non-128-multiple S*D (exercises the guarded 3-D fallback path)
    D_odd = 20  # S*D_odd = 160, not a multiple of 128
    enc_odd = build_encoding(sequence_length, D_odd)
    x_odd = jax.random.normal(jax.random.PRNGKey(2), (B, S, D_odd), dtype=jnp.float32)
    out_odd = jax.block_until_ready(
        positional_encoding_forward(x_odd, prepare_encoding(enc_odd, S, jnp.float32)))
    assert jnp.allclose(out_odd, x_odd + enc_odd[None, :S, :], atol=1e-6), "3-D path mismatch"

    print("KERNEL_OK")
</pallas_src>

<mosaic_0001>
module attributes {stable_mosaic.version = 11 : i64} {
  func.func @_pe_add_kernel(%arg0: i32, %arg1: i32, %arg2: memref<2x256xf32, #tpu.memory_space<vmem>>, %arg3: memref<1x256xf32, #tpu.memory_space<vmem>>, %arg4: memref<2x256xf32, #tpu.memory_space<vmem>>) attributes {dimension_semantics = [#tpu.dimension_semantics<parallel>, #tpu.dimension_semantics<parallel>], iteration_bounds = array<i64: 1, 1>, scalar_prefetch = 0 : i64, scratch_operands = 0 : i64, tpu.core_type = #tpu.core_type<tc>, window_params = [{transform_indices = @transform_0, window_bounds = array<i64: 2, 256>}, {transform_indices = @transform_1, window_bounds = array<i64: 1, 256>}, {transform_indices = @transform_2, window_bounds = array<i64: 2, 256>}]} {
    %c0 = arith.constant 0 : index
    %c0_0 = arith.constant 0 : index
    %0 = vector.load %arg2[%c0, %c0_0] : memref<2x256xf32, #tpu.memory_space<vmem>>, vector<2x256xf32>
    %c0_1 = arith.constant 0 : index
    %c0_2 = arith.constant 0 : index
    %1 = vector.load %arg3[%c0_1, %c0_2] : memref<1x256xf32, #tpu.memory_space<vmem>>, vector<1x256xf32>
    %2 = vector.broadcast %1 : vector<1x256xf32> to vector<2x256xf32>
    %3 = arith.addf %0, %2 : vector<2x256xf32>
    %c0_3 = arith.constant 0 : index
    %c0_4 = arith.constant 0 : index
    %4 = vector.load %arg4[%c0_3, %c0_4] : memref<2x256xf32, #tpu.memory_space<vmem>>, vector<2x256xf32>
    tpu.vector_store %arg4[%c0_3, %c0_4], %3 {strides = array<i32>} : memref<2x256xf32, #tpu.memory_space<vmem>>, vector<2x256xf32>,
    return
  }
  func.func @transform_0(%arg0: i32, %arg1: i32) -> (i32, i32) {
    %c0_i32 = arith.constant 0 : i32
    return %arg1, %arg0 : i32, i32
  }
  func.func @transform_1(%arg0: i32, %arg1: i32) -> (i32, i32) {
    %c0_i32 = arith.constant 0 : i32
    %c0_i32_0 = arith.constant 0 : i32
    return %c0_i32, %arg0 : i32, i32
  }
  func.func @transform_2(%arg0: i32, %arg1: i32) -> (i32, i32) {
    %c0_i32 = arith.constant 0 : i32
    return %arg1, %arg0 : i32, i32
  }
}

</mosaic_0001>

<bundles_post_ra>
// kernel: tpu_custom_call.1
= control target key start
LH: loop header
LB: loop body
LE: loop exit
PB: predicated region body
PF: predicated region fallthrough
CT: control target
= control target key end

     0   :  { %7 = vsyncpa [#allocation3], 0  ;;  %s172_s0 = inlined_call_operand.hbm [shape: f32[2,256], index: 0, kind: input, shape index: {}]   ;;  %s173_s1 = inlined_call_operand.hbm [shape: f32[1,256], index: 1, kind: input, shape index: {}]   ;;  %s174_s2 = inlined_call_operand.hbm [shape: f32[2,256], index: 2, kind: output, shape index: {}]  }
   0x1   :  { %8 = vsyncpa [#allocation6], 0 }
   0x2   :  { %9 = vsyncpa [#allocation4], 0  ;;  %s144_s9 = smov [#allocation2]   ;;  %s145_s11 = smov [#allocation5]  }
   0x3   :  { %s16_s10 = sshll.u32 %s144_s9, 4  ;;  %s26_s12 = sshll.u32 %s145_s11, 4  ;;  %s17_s10 = int_to_ptr.vmem [resolvable:$true] %s16_s10  ;;  %s27_s12 = int_to_ptr.vmem [resolvable:$true] %s26_s12 }
   0x4   :  { %s86_s13 = scalar_lea.vmem %s17_s10, 64  ;;  %p91_p1 = scmp.lt.s32.totalorder %s17_s10, %s17_s10 }
   0x5   :  { %p87_p0 = scmp.ne.s32.totalorder %s17_s10, %s86_s13  ;;  %p92_p2 = scmp.lt.s32.totalorder %s86_s13, %s86_s13 }
   0x7   :  { %p93_p3 = por %p92_p2, %p91_p1 }
   0x9   :  { %p94_p4 = pnand %p93_p3, %p87_p0 }
   0xb   :  { %97 = shalt.err (!%p94_p4)
}
   0xc   :  { %19 = dma.hbm_to_vmem [thread:$0]  %s172_s0, 64, %s17_s10, [#allocation3]  }
   0xd   :  { %s106_s16 = scalar_lea.vmem %s27_s12, 32  ;;  %p111_p6 = scmp.lt.s32.totalorder %s27_s12, %s27_s12 }
   0xe   :  { %p107_p5 = scmp.ne.s32.totalorder %s27_s12, %s106_s16  ;;  %p112_p7 = scmp.lt.s32.totalorder %s106_s16, %s106_s16 }
  0x10   :  { %p113_p8 = por %p112_p7, %p111_p6 }
  0x12   :  { %p114_p9 = pnand %p113_p8, %p107_p5 }
  0x14   :  { %117 = shalt.err (!%p114_p9)
}
  0x15   :  { %29 = dma.hbm_to_vmem [thread:$0]  %s173_s1, 32, %s27_s12, [#allocation6]  }
  0x16   :  { %138 = dma.done.wait [#allocation3], 64  }
  0x17   :  { %139 = vsyncadd [#allocation3], 4294967232 }
  0x18   :  { %140 = dma.done.wait [#allocation6], 32  }
  0x19   :  { %141 = vsyncadd [#allocation6], 4294967264  ;;  %v39_v0 = vlaneseq  ;;  %v146_v1 = vmov 1983009808   ;;  %v37_v7 = vld [vmem:[#allocation5] sm:$0x3] }
  0x1a   :  { %v49_v2 = vunpack.c.l.s4 %v146_v1  ;;  %v36_v12 = vld [vmem:[#allocation2] sm:$0xf]  ;;  %s147_s0 = smov [#allocation7]  }
  0x1b   :  { %v40_v3 = vshrl.u32 %v39_v0, 7  ;;  %s64_s19 = sshll.u32 %s147_s0, 4  ;;  %s65_s19 = int_to_ptr.vmem [resolvable:$true] %s64_s19 }
  0x1c   :  { %v50_v6 = vunpack.c.0.s8 %v49_v2  ;;  %s118_s1 = scalar_lea.vmem %s65_s19, 64  ;;  %p123_p11 = scmp.lt.s32.totalorder %s65_s19, %s65_s19 }
  0x1d   :  { %v41_v4 = vsub.s32 0, %v40_v3  ;;  %v45_v5 = vsub.s32 1, %v40_v3  ;;  %p119_p10 = scmp.ne.s32.totalorder %s65_s19, %s118_s1  ;;  %p124_p12 = scmp.lt.s32.totalorder %s118_s1, %s118_s1 }
  0x1e   :  { %v53_v10 = vsub.s32 %v50_v6, %v40_v3 }
  0x1f   :  { %v42_v8 = vrot.slane %v37_v7, %v41_v4  ;;  %v46_v9 = vrot.slane %v37_v7, %v45_v5  ;;  %p125_p13 = por %p124_p12, %p123_p11 }
  0x21   :  { %v47_v11 = vcombine.low %v42_v8, %v46_v9  ;;  %p126_p0 = pnand %p125_p13, %p119_p10 }
  0x23   :  { %v54_v13 = vrot.slane %v47_v11, %v53_v10 }
  0x25   :  { %v56_v14 = vadd.f32 %v54_v13, %v36_v12 }
  0x27   :  { %57 = vst [vmem:[#allocation7] sm:$0xf] %v56_v14 }
  0x28   :  { %129 = shalt.err (!%p126_p0)
}
  0x29   :  { %67 = dma.vmem_to_hbm [thread:$0]  %s65_s19, 64, %s174_s2, [#allocation4]  }
  0x2a   :  { %142 = dma.done.wait [#allocation4], 64  }
  0x2b   :  { %143 = vsyncadd [#allocation4], 4294967232 }
  0x2c   :  { %71 = vsyncpa [#allocation3], 1 }
  0x2d   :  { %72 = vsyncpa [#allocation6], 1 }
  0x2e   :  { %73 = vsyncpa [#allocation4], 1 }

</bundles_post_ra>
